<compile_context>
chip_gen: v5e
topology: v5e:2x2
jax: 0.10.0
libtpu: 0.0.40
codegen_flags: <defaults>
</compile_context>

<pallas_src>
import jax
import jax.numpy as jnp
from jax.experimental import pallas as pl
from jax.experimental.pallas import tpu as pltpu

LANES = 128          # vreg lane width
BLOCK_ROWS = 2048    # (2048, 128) f32 = 1 MiB per block


def linear1x1_kernel(x_ref, w_ref, b_ref, o_ref):
    # x_ref: f32 tile in VMEM; w_ref: (1, 1) f32 in SMEM; b_ref: (1,) f32 in SMEM.
    w = w_ref[0, 0]
    b = b_ref[0]
    # Pure VPU elementwise FMA — a (N,1)x(1,1) "matmul" is just a scalar scale+shift.
    o_ref[...] = (x_ref[...] * w + b).astype(o_ref.dtype)


def linear_forward(x, weight, bias):
    """y = x @ weight.T + bias for nn.Linear(1, 1) semantics.

    x: (N, 1) f32, weight: (1, 1) f32, bias: (1,) f32  ->  (N, 1) f32
    """
    N, in_f = x.shape
    out_f = weight.shape[0]
    assert in_f == 1 and out_f == 1, "kernel specialized to nn.Linear(1, 1)"

    smem = pltpu.MemorySpace.SMEM
    vmem = pltpu.MemorySpace.VMEM

    if N % LANES == 0 and N >= LANES:
        # --- Vreg-dense streaming path (large N) ---------------------------
        # Free metadata reshape: (N, 1) row-major == (rows, 128) row-major.
        rows = N // LANES
        br = min(BLOCK_ROWS, rows)  # br==rows (full dim) or a multiple of 8
        x2 = x.reshape(rows, LANES)

        y2 = pl.pallas_call(
            linear1x1_kernel,
            out_shape=jax.ShapeDtypeStruct((rows, LANES), x.dtype),
            grid_spec=pltpu.PrefetchScalarGridSpec(
                num_scalar_prefetch=0,
                grid=(pl.cdiv(rows, br),),
                in_specs=[
                    pl.BlockSpec((br, LANES), lambda i: (i, 0)),  # x tiles
                    pl.BlockSpec(memory_space=smem),              # weight (1,1)
                    pl.BlockSpec(memory_space=smem),              # bias (1,)
                ],
                out_specs=pl.BlockSpec((br, LANES), lambda i: (i, 0)),
            ),
            compiler_params=pltpu.CompilerParams(
                dimension_semantics=("parallel",),   # megacore / v7x 2-TC split
                vmem_limit_bytes=32 * 1024 * 1024,   # plenty for 4 MiB of buffers
            ),
        )(x2, weight, bias)
        return y2.reshape(N, out_f)

    # --- Tiny / lane-ragged path (e.g. the N=100 demo) ---------------------
    # Single full-array block, no grid, no pad/slice/reshape in the wrapper.
    # Layout is lane-sparse but the whole problem is a handful of vregs, so
    # wall time is dominated by launch overhead, not stores.
    return pl.pallas_call(
        linear1x1_kernel,
        out_shape=jax.ShapeDtypeStruct((N, in_f), x.dtype),
        in_specs=[
            pl.BlockSpec(memory_space=vmem),   # x, full block
            pl.BlockSpec(memory_space=smem),   # weight (1,1) scalar
            pl.BlockSpec(memory_space=smem),   # bias (1,) scalar
        ],
        out_specs=pl.BlockSpec(memory_space=vmem),
    )(x, weight, bias)


if __name__ == "__main__":
    key = jax.random.PRNGKey(0)
    k_w, k_b = jax.random.split(key)

    # Input mirrors: torch.linspace(-1, 1).view(-1, 1) -> (100, 1)
    N = 100
    x = jnp.linspace(-1.0, 1.0, N, dtype=jnp.float32).reshape(-1, 1)

    # nn.Linear(1, 1) init: U(-1/sqrt(in_features), 1/sqrt(in_features)) = U(-1, 1)
    weight = jax.random.uniform(k_w, (1, 1), jnp.float32, minval=-1.0, maxval=1.0)
    bias = jax.random.uniform(k_b, (1,), jnp.float32, minval=-1.0, maxval=1.0)

    # Tiny path (matches the original module's input shape).
    y = linear_forward(x, weight, bias)
    jax.block_until_ready(y)
    y_ref = x @ weight.T + bias
    assert y.shape == (N, 1)
    assert jnp.allclose(y, y_ref, atol=1e-6), "mismatch vs reference (tiny path)"

    # Also exercise the vreg-dense gridded path: (4096, 128) in 2 blocks.
    N2 = 128 * 4096
    x2 = jax.random.normal(jax.random.PRNGKey(1), (N2, 1), dtype=jnp.float32)
    y2 = linear_forward(x2, weight, bias)
    jax.block_until_ready(y2)
    y2_ref = x2 @ weight.T + bias
    assert y2.shape == (N2, 1)
    assert jnp.allclose(y2, y2_ref, atol=1e-6), "mismatch vs reference (grid path)"

    print("KERNEL_OK")
</pallas_src>

<mosaic_0001>
module attributes {stable_mosaic.version = 11 : i64} {
  func.func @linear1x1_kernel(%arg0: memref<100x1xf32, #tpu.memory_space<vmem>>, %arg1: memref<1x1xf32, #tpu.memory_space<smem>>, %arg2: memref<1xf32, #tpu.memory_space<smem>>, %arg3: memref<100x1xf32, #tpu.memory_space<vmem>>) attributes {dimension_semantics = [], scalar_prefetch = 0 : i64, scratch_operands = 0 : i64, tpu.core_type = #tpu.core_type<tc>} {
    %c0 = arith.constant 0 : index
    %c0_0 = arith.constant 0 : index
    %0 = memref.load %arg1[%c0, %c0_0] : memref<1x1xf32, #tpu.memory_space<smem>>
    %c0_1 = arith.constant 0 : index
    %1 = memref.load %arg2[%c0_1] : memref<1xf32, #tpu.memory_space<smem>>
    %c0_2 = arith.constant 0 : index
    %c0_3 = arith.constant 0 : index
    %2 = vector.load %arg0[%c0_2, %c0_3] : memref<100x1xf32, #tpu.memory_space<vmem>>, vector<100x1xf32>
    %3 = vector.broadcast %0 : f32 to vector<100x1xf32>
    %4 = arith.mulf %2, %3 : vector<100x1xf32>
    %5 = vector.broadcast %1 : f32 to vector<100x1xf32>
    %6 = arith.addf %4, %5 : vector<100x1xf32>
    %c0_4 = arith.constant 0 : index
    %c0_5 = arith.constant 0 : index
    %7 = vector.load %arg3[%c0_4, %c0_5] : memref<100x1xf32, #tpu.memory_space<vmem>>, vector<100x1xf32>
    tpu.vector_store %arg3[%c0_4, %c0_5], %6 {strides = array<i32>} : memref<100x1xf32, #tpu.memory_space<vmem>>, vector<100x1xf32>,
    return
  }
}

</mosaic_0001>

<bundles_post_ra>
// kernel: tpu_custom_call.1
= control target key start
LH: loop header
LB: loop body
LE: loop exit
PB: predicated region body
PF: predicated region fallthrough
CT: control target
= control target key end

     0   :  { %vm59_vm0 = vcmask 7168   ;;  %vm72_vm1 = vcmask 3072   ;;  %s194_s0 = inlined_call_operand.vmem [shape: f32[100,1], index: 0, kind: input, shape index: {}]   ;;  %s195_s1 = inlined_call_operand.<no memory space> [shape: f32[1,1], index: 1, kind: input, shape index: {}]   ;;  %s196_s2 = inlined_call_operand.<no memory space> [shape: f32[1], index: 2, kind: input, shape index: {}]   ;;  %s197_s3 = inlined_call_operand.vmem [shape: f32[100,1], index: 3, kind: output, shape index: {}]  }
   0x1   :  { %v18_v0 = vld [vmem:[%s194_s0] sm:$0xff]  ;;  %v31_v1 = vstv %s195_s1  ;;  %v45_v2 = vstv %s196_s2  ;;  %v19_v3 = vld [vmem:[%s194_s0 + $0x8] sm:$0xff] }
   0x2   :  { %v32_v4 = vmul.f32 %v31_v1, %v18_v0  ;;  %v33_v5 = vmul.f32 %v31_v1, %v19_v3  ;;  %v20_v6 = vld [vmem:[%s194_s0 + $0x10] sm:$0xff]  ;;  %v21_v7 = vld [vmem:[%s194_s0 + $0x18] sm:$0xff]  ;;  %v22_v8 = vld [vmem:[%s194_s0 + $0x20] sm:$0xff] }
   0x3   :  { %v34_v9 = vmul.f32 %v31_v1, %v20_v6  ;;  %v35_v10 = vmul.f32 %v31_v1, %v21_v7  ;;  %v36_v11 = vmul.f32 %v31_v1, %v22_v8  ;;  %v23_v12 = vld [vmem:[%s194_s0 + $0x28] sm:$0xff]  ;;  %v24_v13 = vld [vmem:[%s194_s0 + $0x30] sm:$0xff]  ;;  %v25_v14 = vld [vmem:[%s194_s0 + $0x38] sm:$0xff] }
   0x4   :  { %v46_v15 = vadd.f32 %v45_v2, %v32_v4  ;;  %v47_v16 = vadd.f32 %v45_v2, %v33_v5  ;;  %v37_v17 = vmul.f32 %v31_v1, %v23_v12  ;;  %v38_v18 = vmul.f32 %v31_v1, %v24_v13  ;;  %v26_v19 = vld [vmem:[%s194_s0 + $0x40] sm:$0xff]  ;;  %v27_v20 = vld [vmem:[%s194_s0 + $0x48] sm:$0xff]  ;;  %v28_v24 = vld [vmem:[%s194_s0 + $0x50] sm:$0xff] }
   0x5   :  { %v48_v21 = vadd.f32 %v45_v2, %v34_v9  ;;  %v49_v22 = vadd.f32 %v45_v2, %v35_v10  ;;  %v39_v23 = vmul.f32 %v31_v1, %v25_v14  ;;  %v50_v25 = vadd.f32 %v45_v2, %v36_v11  ;;  %v29_v27 = vld [vmem:[%s194_s0 + $0x58] sm:$0xff]  ;;  %v30_v30 = vld [vmem:[%s194_s0 + $0x60] sm:$0xf] }
   0x6   :  { %60 = vst.msk [vmem:[%s197_s3] sm:$0xff] %vm59_vm0, %v46_v15  ;;  %v40_v26 = vmul.f32 %v31_v1, %v26_v19  ;;  %v51_v28 = vadd.f32 %v45_v2, %v37_v17  ;;  %v41_v29 = vmul.f32 %v31_v1, %v27_v20  ;;  %v52_v31 = vadd.f32 %v45_v2, %v38_v18 }
   0x7   :  { %61 = vst.msk [vmem:[%s197_s3 + $0x8] sm:$0xff] %vm59_vm0, %v47_v16  ;;  %v42_v32 = vmul.f32 %v31_v1, %v28_v24  ;;  %v53_v33 = vadd.f32 %v45_v2, %v39_v23  ;;  %v43_v34 = vmul.f32 %v31_v1, %v29_v27  ;;  %v44_v36 = vmul.f32 %v31_v1, %v30_v30 }
   0x8   :  { %62 = vst.msk [vmem:[%s197_s3 + $0x10] sm:$0xff] %vm59_vm0, %v48_v21  ;;  %v54_v35 = vadd.f32 %v45_v2, %v40_v26  ;;  %v55_v37 = vadd.f32 %v45_v2, %v41_v29 }
   0x9   :  { %63 = vst.msk [vmem:[%s197_s3 + $0x18] sm:$0xff] %vm59_vm0, %v49_v22  ;;  %v56_v38 = vadd.f32 %v45_v2, %v42_v32  ;;  %v57_v39 = vadd.f32 %v45_v2, %v43_v34  ;;  %v58_v40 = vadd.f32 %v45_v2, %v44_v36 }
   0xa   :  { %64 = vst.msk [vmem:[%s197_s3 + $0x20] sm:$0xff] %vm59_vm0, %v50_v25 }
   0xb   :  { %65 = vst.msk [vmem:[%s197_s3 + $0x28] sm:$0xff] %vm59_vm0, %v51_v28 }
   0xc   :  { %66 = vst.msk [vmem:[%s197_s3 + $0x30] sm:$0xff] %vm59_vm0, %v52_v31 }
   0xd   :  { %67 = vst.msk [vmem:[%s197_s3 + $0x38] sm:$0xff] %vm59_vm0, %v53_v33 }
   0xe   :  { %68 = vst.msk [vmem:[%s197_s3 + $0x40] sm:$0xff] %vm59_vm0, %v54_v35 }
   0xf   :  { %69 = vst.msk [vmem:[%s197_s3 + $0x48] sm:$0xff] %vm59_vm0, %v55_v37 }
  0x10   :  { %70 = vst.msk [vmem:[%s197_s3 + $0x50] sm:$0xff] %vm59_vm0, %v56_v38 }
  0x11   :  { %71 = vst.msk [vmem:[%s197_s3 + $0x58] sm:$0xff] %vm59_vm0, %v57_v39 }
  0x12   :  { %73 = vst.msk [vmem:[%s197_s3 + $0x60] sm:$0xf] %vm72_vm1, %v58_v40 }

</bundles_post_ra>
